<compile_context>
chip_gen: v7x
topology: tpu7x:2x2x1
jax: 0.10.0
libtpu: 0.0.40
codegen_flags: <defaults>
</compile_context>

<pallas_src>
import math
import functools

import jax
import jax.numpy as jnp
from jax import lax
from jax.experimental import pallas as pl
from jax.experimental.pallas import tpu as pltpu


# ---------------------------------------------------------------------------
# Kernel 1: per-(batch, head, seq-tile) fused QKV projection.
# ---------------------------------------------------------------------------
def _qkv_proj_kernel(x_ref, wq_ref, wk_ref, wv_ref, bq_ref, bk_ref, bv_ref,
                     q_ref, k_ref, v_ref, *, scale):
    x = x_ref[0]                                    # (TS, E)
    q = jnp.dot(x, wq_ref[0], preferred_element_type=jnp.float32) + bq_ref[0]
    k = jnp.dot(x, wk_ref[0], preferred_element_type=jnp.float32) + bk_ref[0]
    v = jnp.dot(x, wv_ref[0], preferred_element_type=jnp.float32) + bv_ref[0]
    # Fold 1/sqrt(head_dim) into q (applied after bias, matching reference).
    q_ref[0, 0] = (q * scale).astype(q_ref.dtype)
    k_ref[0, 0] = k.astype(k_ref.dtype)
    v_ref[0, 0] = v.astype(v_ref.dtype)


# ---------------------------------------------------------------------------
# Kernel 2: flash attention (online softmax) fused with the output projection.
# grid = (B, NQ, H, NK); output (B, S, E) accumulated across heads in VMEM.
# ---------------------------------------------------------------------------
def _flash_out_kernel(q_ref, k_ref, v_ref, wo_ref, bo_ref, o_ref,
                      m_sc, l_sc, acc_sc, oacc_sc, *, tq, tk, is_causal):
    # All program ids are bound at the top level of the kernel (never inside
    # a pl.when body) -- required for clean lowering.
    qi = pl.program_id(1)
    h = pl.program_id(2)
    ki = pl.program_id(3)
    nh = pl.num_programs(2)
    nk = pl.num_programs(3)

    @pl.when(ki == 0)
    def _():
        m_sc[...] = jnp.full_like(m_sc, -jnp.inf)
        l_sc[...] = jnp.zeros_like(l_sc)
        acc_sc[...] = jnp.zeros_like(acc_sc)

    @pl.when((h == 0) & (ki == 0))
    def _():
        oacc_sc[...] = jnp.zeros_like(oacc_sc)

    def _update():
        q = q_ref[0, 0]                             # (TQ, hd), pre-scaled
        k = k_ref[0, 0]                             # (TK, hd)
        v = v_ref[0, 0]                             # (TK, hd)
        # Contract last dims directly: no explicit k.T (keeps the XLU idle).
        s = lax.dot_general(q, k, (((1,), (1,)), ((), ())),
                            preferred_element_type=jnp.float32)   # (TQ, TK)
        if is_causal:
            row = qi * tq + lax.broadcasted_iota(jnp.int32, s.shape, 0)
            col = ki * tk + lax.broadcasted_iota(jnp.int32, s.shape, 1)
            s = jnp.where(col > row, -1e30, s)      # finite mask -> no NaN
        m_prev = m_sc[...]
        m_new = jnp.maximum(m_prev, jnp.max(s, axis=-1, keepdims=True))
        alpha = jnp.exp(m_prev - m_new)
        p = jnp.exp(s - m_new)
        l_sc[...] = alpha * l_sc[...] + jnp.sum(p, axis=-1, keepdims=True)
        acc_sc[...] = alpha * acc_sc[...] + jnp.dot(
            p.astype(v.dtype), v, preferred_element_type=jnp.float32)
        m_sc[...] = m_new

    if is_causal:
        # Compute-skip for kv tiles fully above the diagonal (their DMA is
        # also elided via the clamped k/v index_map in the wrapper).
        @pl.when(ki * tk <= qi * tq + (tq - 1))
        def _():
            _update()
    else:
        _update()

    @pl.when(ki == nk - 1)
    def _():
        # End of this head's kv sweep: normalize and fold W_out[h] into the
        # lane-dense (TQ, E) accumulator (== concat(heads) @ W_out, no concat).
        attn_h = acc_sc[...] / l_sc[...]            # (TQ, hd) f32
        oacc_sc[...] += jnp.dot(attn_h.astype(wo_ref.dtype), wo_ref[0],
                                preferred_element_type=jnp.float32)

    @pl.when((h == nh - 1) & (ki == nk - 1))
    def _():
        o_ref[0] = (oacc_sc[...] + bo_ref[...]).astype(o_ref.dtype)


# ---------------------------------------------------------------------------
# Tiling / VMEM helpers
# ---------------------------------------------------------------------------
def _pick_tile(n, preferred):
    """Largest multiple-of-8 tile <= preferred that divides n, else n."""
    preferred = max(8, (int(preferred) // 8) * 8)
    if n <= preferred:
        return n
    for t in range(preferred, 7, -8):
        if n % t == 0:
            return t
    return n   # full dim is always a legal block dim


def _vmem_limit_bytes():
    """Per-generation VMEM budget: ~3/4 of physical, capped at 112 MiB."""
    try:
        cap = int(pltpu.get_tpu_info().vmem_capacity_bytes)
    except Exception:
        cap = 128 * 1024 * 1024
    return max(32 * 1024 * 1024, min(int(cap * 3 // 4), 112 * 1024 * 1024))


def _kernels_vmem_bytes(ts, tq, tk, hd, e, itemsize):
    """Rough double-buffered VMEM footprint of the two kernels."""
    k1 = 2 * itemsize * (ts * e + 3 * e * hd + 3 * ts * hd) + 2 * 4 * 3 * hd
    k2 = (2 * itemsize * (tq * hd + 2 * tk * hd + hd * e + tq * e)
          + 2 * 4 * e + 4 * tq * (hd + e + 2))
    return max(k1, k2)


# ---------------------------------------------------------------------------
# Wrapper
# ---------------------------------------------------------------------------
def multi_head_self_attention(x, w_qkv, b_qkv, w_out, b_out, num_heads,
                              is_causal=False, compute_dtype=None,
                              seq_tile=512, kv_tile=256):
    """x: (B,S,E); w_qkv: (E,3E) (in,out layout, torch head-interleaved);
    b_qkv: (3E,); w_out: (E,E) (in,out); b_out: (E,)."""
    B, S, E = x.shape
    H = num_heads
    hd = E // H
    assert hd * H == E
    if compute_dtype is None:
        compute_dtype = x.dtype
    out_dtype = x.dtype
    itemsize = jnp.dtype(compute_dtype).itemsize

    vmem_limit = _vmem_limit_bytes()
    budget = int(vmem_limit * 0.8)

    # Derive tiles from the VMEM budget instead of a fixed 128.
    pref = max(8, int(seq_tile))
    while True:
        TS = TQ = _pick_tile(S, pref)
        TK = _pick_tile(S, min(int(kv_tile), pref))
        if (_kernels_vmem_bytes(TS, TQ, TK, hd, E, itemsize) <= budget
                or pref <= 128):
            break
        pref //= 2
    NS, NQ, NK = S // TS, S // TQ, S // TK

    # --- one-time wrapper-side weight re-layout:
    # torch interleaved columns [h0:(q,k,v), h1:(q,k,v), ...] -> per-head blocks.
    w3 = w_qkv.reshape(E, H, 3, hd)
    w_q = jnp.transpose(w3[:, :, 0, :], (1, 0, 2)).astype(compute_dtype)  # (H,E,hd)
    w_k = jnp.transpose(w3[:, :, 1, :], (1, 0, 2)).astype(compute_dtype)
    w_v = jnp.transpose(w3[:, :, 2, :], (1, 0, 2)).astype(compute_dtype)
    b3 = b_qkv.reshape(H, 3, hd).astype(jnp.float32)
    b_q = b3[:, 0, :].reshape(H, 1, hd)
    b_k = b3[:, 1, :].reshape(H, 1, hd)
    b_v = b3[:, 2, :].reshape(H, 1, hd)
    w_o = w_out.reshape(H, hd, E).astype(compute_dtype)                    # (H,hd,E)
    b_o = b_out.reshape(1, E).astype(jnp.float32)

    xc = x.astype(compute_dtype)
    scale = 1.0 / math.sqrt(hd)

    # ---------------- Kernel 1: QKV projection -> (B, H, S, hd) x3 -----------
    # Grid order: keep the larger operand resident across the inner sweep.
    weights_resident = (3 * E) > (H * TS)
    if weights_resident:
        grid1 = (B, H, NS)
        x_map = lambda b, h, si: (b, si, 0)
        w_map = lambda b, h, si: (h, 0, 0)
        qkv_map = lambda b, h, si: (b, h, si, 0)
    else:
        grid1 = (B, NS, H)
        x_map = lambda b, si, h: (b, si, 0)
        w_map = lambda b, si, h: (h, 0, 0)
        qkv_map = lambda b, si, h: (b, h, si, 0)

    q, k, v = pl.pallas_call(
        functools.partial(_qkv_proj_kernel, scale=scale),
        out_shape=[jax.ShapeDtypeStruct((B, H, S, hd), compute_dtype)] * 3,
        grid_spec=pltpu.PrefetchScalarGridSpec(
            num_scalar_prefetch=0,
            grid=grid1,
            in_specs=[
                pl.BlockSpec((1, TS, E), x_map),     # x tile
                pl.BlockSpec((1, E, hd), w_map),     # W_q[h]
                pl.BlockSpec((1, E, hd), w_map),     # W_k[h]
                pl.BlockSpec((1, E, hd), w_map),     # W_v[h]
                pl.BlockSpec((1, 1, hd), w_map),     # b_q[h]
                pl.BlockSpec((1, 1, hd), w_map),     # b_k[h]
                pl.BlockSpec((1, 1, hd), w_map),     # b_v[h]
            ],
            out_specs=[pl.BlockSpec((1, 1, TS, hd), qkv_map)] * 3,
        ),
        compiler_params=pltpu.CompilerParams(
            dimension_semantics=("parallel", "parallel", "parallel"),
            vmem_limit_bytes=vmem_limit),
    )(xc, w_q, w_k, w_v, b_q, b_k, b_v)

    # ---------------- Kernel 2: flash attention + fused output projection ----
    if is_causal:
        def kv_map(b, qi, h, ki):
            # Clamp to the last valid kv tile: skipped steps repeat the block
            # index so their DMA is elided (compute skipped via pl.when).
            last_valid = (qi * TQ + (TQ - 1)) // TK
            return (b, h, jnp.minimum(ki, last_valid), 0)
    else:
        def kv_map(b, qi, h, ki):
            return (b, h, ki, 0)

    out = pl.pallas_call(
        functools.partial(_flash_out_kernel, tq=TQ, tk=TK, is_causal=is_causal),
        out_shape=jax.ShapeDtypeStruct((B, S, E), out_dtype),
        grid_spec=pltpu.PrefetchScalarGridSpec(
            num_scalar_prefetch=0,
            grid=(B, NQ, H, NK),
            in_specs=[
                pl.BlockSpec((1, 1, TQ, hd), lambda b, qi, h, ki: (b, h, qi, 0)),
                pl.BlockSpec((1, 1, TK, hd), kv_map),
                pl.BlockSpec((1, 1, TK, hd), kv_map),
                pl.BlockSpec((1, hd, E), lambda b, qi, h, ki: (h, 0, 0)),  # W_out[h]
                pl.BlockSpec((1, E), lambda b, qi, h, ki: (0, 0)),         # b_out
            ],
            out_specs=pl.BlockSpec((1, TQ, E), lambda b, qi, h, ki: (b, qi, 0)),
            scratch_shapes=[
                pltpu.VMEM((TQ, 1), jnp.float32),    # running max m
                pltpu.VMEM((TQ, 1), jnp.float32),    # running denom l
                pltpu.VMEM((TQ, hd), jnp.float32),   # per-head attn accumulator
                pltpu.VMEM((TQ, E), jnp.float32),    # lane-dense output accumulator
            ],
        ),
        compiler_params=pltpu.CompilerParams(
            dimension_semantics=("parallel", "parallel", "arbitrary", "arbitrary"),
            vmem_limit_bytes=vmem_limit),
    )(q, k, v, w_o, b_o)

    return out


# ---------------------------------------------------------------------------
# Pure-JAX reference mirroring the PyTorch forward.
# ---------------------------------------------------------------------------
def _reference(x, w_qkv, b_qkv, w_out, b_out, num_heads, is_causal=False):
    B, S, E = x.shape
    hd = E // num_heads
    qkv = x @ w_qkv + b_qkv                                      # (B, S, 3E)
    qkv = qkv.reshape(B, S, num_heads, 3 * hd).transpose(0, 2, 1, 3)
    q, k, v = qkv[..., :hd], qkv[..., hd:2 * hd], qkv[..., 2 * hd:]
    scores = jnp.einsum('bhqd,bhkd->bhqk', q, k) / math.sqrt(hd)
    if is_causal:
        m = jnp.triu(jnp.ones((S, S)), k=1).astype(bool)
        scores = jnp.where(m, -jnp.inf, scores)
    attn = jax.nn.softmax(scores, axis=-1)
    out = jnp.einsum('bhqk,bhkd->bhqd', attn, v)
    out = out.transpose(0, 2, 1, 3).reshape(B, S, E)
    return out @ w_out + b_out


if __name__ == "__main__":
    B, S, E, H = 2, 8, 32, 4

    key = jax.random.PRNGKey(0)
    kx, kw1, kb1, kw2, kb2 = jax.random.split(key, 5)

    x = jax.random.normal(kx, (B, S, E), dtype=jnp.float32)

    # "Linear"-style init (uniform +-1/sqrt(fan_in)), stored in (in, out) layout.
    bound1 = 1.0 / math.sqrt(E)
    w_qkv = jax.random.uniform(kw1, (E, 3 * E), jnp.float32, -bound1, bound1)
    b_qkv = jax.random.uniform(kb1, (3 * E,), jnp.float32, -bound1, bound1)
    w_out = jax.random.uniform(kw2, (E, E), jnp.float32, -bound1, bound1)
    b_out = jax.random.uniform(kb2, (E,), jnp.float32, -bound1, bound1)

    # f32 compute path, non-causal (module default)
    out = jax.block_until_ready(
        multi_head_self_attention(x, w_qkv, b_qkv, w_out, b_out, num_heads=H))
    ref = _reference(x, w_qkv, b_qkv, w_out, b_out, num_heads=H)
    assert out.shape == (B, S, E)
    assert jnp.allclose(out, ref, atol=2e-3, rtol=2e-3), \
        float(jnp.max(jnp.abs(out - ref)))

    # f32 compute path, causal
    out_c = jax.block_until_ready(
        multi_head_self_attention(x, w_qkv, b_qkv, w_out, b_out, num_heads=H,
                                  is_causal=True))
    ref_c = _reference(x, w_qkv, b_qkv, w_out, b_out, num_heads=H, is_causal=True)
    assert jnp.allclose(out_c, ref_c, atol=2e-3, rtol=2e-3), \
        float(jnp.max(jnp.abs(out_c - ref_c)))

    # bf16 MXU-input path (f32 accumulation) — the fast path on v6e/v7x
    out_bf = jax.block_until_ready(
        multi_head_self_attention(x, w_qkv, b_qkv, w_out, b_out, num_heads=H,
                                  compute_dtype=jnp.bfloat16))
    assert jnp.allclose(out_bf, ref, atol=5e-2, rtol=5e-2), \
        float(jnp.max(jnp.abs(out_bf - ref)))

    print("KERNEL_OK")
</pallas_src>

<mosaic_0001>
module attributes {stable_mosaic.version = 11 : i64} {
  func.func @_qkv_proj_kernel(%arg0: i32, %arg1: i32, %arg2: i32, %arg3: memref<1x8x32xf32, #tpu.memory_space<vmem>>, %arg4: memref<1x32x8xf32, #tpu.memory_space<vmem>>, %arg5: memref<1x32x8xf32, #tpu.memory_space<vmem>>, %arg6: memref<1x32x8xf32, #tpu.memory_space<vmem>>, %arg7: memref<1x1x8xf32, #tpu.memory_space<vmem>>, %arg8: memref<1x1x8xf32, #tpu.memory_space<vmem>>, %arg9: memref<1x1x8xf32, #tpu.memory_space<vmem>>, %arg10: memref<1x1x8x8xf32, #tpu.memory_space<vmem>>, %arg11: memref<1x1x8x8xf32, #tpu.memory_space<vmem>>, %arg12: memref<1x1x8x8xf32, #tpu.memory_space<vmem>>) attributes {dimension_semantics = [#tpu.dimension_semantics<parallel>, #tpu.dimension_semantics<parallel>, #tpu.dimension_semantics<parallel>], iteration_bounds = array<i64: 2, 4, 1>, scalar_prefetch = 0 : i64, scratch_operands = 0 : i64, tpu.core_type = #tpu.core_type<tc>, window_params = [{transform_indices = @transform_0, window_bounds = array<i64: 1, 8, 32>}, {transform_indices = @transform_1, window_bounds = array<i64: 1, 32, 8>}, {transform_indices = @transform_2, window_bounds = array<i64: 1, 32, 8>}, {transform_indices = @transform_3, window_bounds = array<i64: 1, 32, 8>}, {transform_indices = @transform_4, window_bounds = array<i64: 1, 1, 8>}, {transform_indices = @transform_5, window_bounds = array<i64: 1, 1, 8>}, {transform_indices = @transform_6, window_bounds = array<i64: 1, 1, 8>}, {transform_indices = @transform_7, window_bounds = array<i64: 1, 1, 8, 8>}, {transform_indices = @transform_8, window_bounds = array<i64: 1, 1, 8, 8>}, {transform_indices = @transform_9, window_bounds = array<i64: 1, 1, 8, 8>}]} {
    %c0 = arith.constant 0 : index
    %c0_0 = arith.constant 0 : index
    %c0_1 = arith.constant 0 : index
    %0 = vector.load %arg3[%c0, %c0_0, %c0_1] : memref<1x8x32xf32, #tpu.memory_space<vmem>>, vector<1x8x32xf32>
    %1 = vector.shape_cast %0 : vector<1x8x32xf32> to vector<8x32xf32>
    %c0_2 = arith.constant 0 : index
    %c0_3 = arith.constant 0 : index
    %c0_4 = arith.constant 0 : index
    %2 = vector.load %arg4[%c0_2, %c0_3, %c0_4] : memref<1x32x8xf32, #tpu.memory_space<vmem>>, vector<1x32x8xf32>
    %3 = vector.shape_cast %2 : vector<1x32x8xf32> to vector<32x8xf32>
    %cst = arith.constant dense<0.000000e+00> : vector<8x8xf32>
    %4 = tpu.matmul %1, %3, %cst {dimension_numbers = #tpu.dot_dimension_numbers<[1], [0], [0], [1], [0, 0, 1, 1], [], []>} : vector<8x32xf32>, vector<32x8xf32>, vector<8x8xf32> -> vector<8x8xf32>
    %c0_5 = arith.constant 0 : index
    %c0_6 = arith.constant 0 : index
    %c0_7 = arith.constant 0 : index
    %5 = vector.load %arg7[%c0_5, %c0_6, %c0_7] : memref<1x1x8xf32, #tpu.memory_space<vmem>>, vector<1x1x8xf32>
    %6 = vector.shape_cast %5 : vector<1x1x8xf32> to vector<1x8xf32>
    %7 = vector.broadcast %6 : vector<1x8xf32> to vector<8x8xf32>
    %8 = arith.addf %4, %7 : vector<8x8xf32>
    %c0_8 = arith.constant 0 : index
    %c0_9 = arith.constant 0 : index
    %c0_10 = arith.constant 0 : index
    %9 = vector.load %arg5[%c0_8, %c0_9, %c0_10] : memref<1x32x8xf32, #tpu.memory_space<vmem>>, vector<1x32x8xf32>
    %10 = vector.shape_cast %9 : vector<1x32x8xf32> to vector<32x8xf32>
    %cst_11 = arith.constant dense<0.000000e+00> : vector<8x8xf32>
    %11 = tpu.matmul %1, %10, %cst_11 {dimension_numbers = #tpu.dot_dimension_numbers<[1], [0], [0], [1], [0, 0, 1, 1], [], []>} : vector<8x32xf32>, vector<32x8xf32>, vector<8x8xf32> -> vector<8x8xf32>
    %c0_12 = arith.constant 0 : index
    %c0_13 = arith.constant 0 : index
    %c0_14 = arith.constant 0 : index
    %12 = vector.load %arg8[%c0_12, %c0_13, %c0_14] : memref<1x1x8xf32, #tpu.memory_space<vmem>>, vector<1x1x8xf32>
    %13 = vector.shape_cast %12 : vector<1x1x8xf32> to vector<1x8xf32>
    %14 = vector.broadcast %13 : vector<1x8xf32> to vector<8x8xf32>
    %15 = arith.addf %11, %14 : vector<8x8xf32>
    %c0_15 = arith.constant 0 : index
    %c0_16 = arith.constant 0 : index
    %c0_17 = arith.constant 0 : index
    %16 = vector.load %arg6[%c0_15, %c0_16, %c0_17] : memref<1x32x8xf32, #tpu.memory_space<vmem>>, vector<1x32x8xf32>
    %17 = vector.shape_cast %16 : vector<1x32x8xf32> to vector<32x8xf32>
    %cst_18 = arith.constant dense<0.000000e+00> : vector<8x8xf32>
    %18 = tpu.matmul %1, %17, %cst_18 {dimension_numbers = #tpu.dot_dimension_numbers<[1], [0], [0], [1], [0, 0, 1, 1], [], []>} : vector<8x32xf32>, vector<32x8xf32>, vector<8x8xf32> -> vector<8x8xf32>
    %c0_19 = arith.constant 0 : index
    %c0_20 = arith.constant 0 : index
    %c0_21 = arith.constant 0 : index
    %19 = vector.load %arg9[%c0_19, %c0_20, %c0_21] : memref<1x1x8xf32, #tpu.memory_space<vmem>>, vector<1x1x8xf32>
    %20 = vector.shape_cast %19 : vector<1x1x8xf32> to vector<1x8xf32>
    %21 = vector.broadcast %20 : vector<1x8xf32> to vector<8x8xf32>
    %22 = arith.addf %18, %21 : vector<8x8xf32>
    %cst_22 = arith.constant 0.353553385 : f32
    %23 = vector.broadcast %cst_22 : f32 to vector<8x8xf32>
    %24 = arith.mulf %8, %23 : vector<8x8xf32>
    %c0_23 = arith.constant 0 : index
    %c0_24 = arith.constant 0 : index
    %c0_25 = arith.constant 0 : index
    %c0_26 = arith.constant 0 : index
    %25 = vector.load %arg10[%c0_23, %c0_24, %c0_25, %c0_26] : memref<1x1x8x8xf32, #tpu.memory_space<vmem>>, vector<1x1x8x8xf32>
    %26 = vector.shape_cast %25 : vector<1x1x8x8xf32> to vector<8x8xf32>
    %27 = vector.shape_cast %24 : vector<8x8xf32> to vector<1x1x8x8xf32>
    tpu.vector_store %arg10[%c0_23, %c0_24, %c0_25, %c0_26], %27 {strides = array<i32>} : memref<1x1x8x8xf32, #tpu.memory_space<vmem>>, vector<1x1x8x8xf32>,
    %c0_27 = arith.constant 0 : index
    %c0_28 = arith.constant 0 : index
    %c0_29 = arith.constant 0 : index
    %c0_30 = arith.constant 0 : index
    %28 = vector.load %arg11[%c0_27, %c0_28, %c0_29, %c0_30] : memref<1x1x8x8xf32, #tpu.memory_space<vmem>>, vector<1x1x8x8xf32>
    %29 = vector.shape_cast %28 : vector<1x1x8x8xf32> to vector<8x8xf32>
    %30 = vector.shape_cast %15 : vector<8x8xf32> to vector<1x1x8x8xf32>
    tpu.vector_store %arg11[%c0_27, %c0_28, %c0_29, %c0_30], %30 {strides = array<i32>} : memref<1x1x8x8xf32, #tpu.memory_space<vmem>>, vector<1x1x8x8xf32>,
    %c0_31 = arith.constant 0 : index
    %c0_32 = arith.constant 0 : index
    %c0_33 = arith.constant 0 : index
    %c0_34 = arith.constant 0 : index
    %31 = vector.load %arg12[%c0_31, %c0_32, %c0_33, %c0_34] : memref<1x1x8x8xf32, #tpu.memory_space<vmem>>, vector<1x1x8x8xf32>
    %32 = vector.shape_cast %31 : vector<1x1x8x8xf32> to vector<8x8xf32>
    %33 = vector.shape_cast %22 : vector<8x8xf32> to vector<1x1x8x8xf32>
    tpu.vector_store %arg12[%c0_31, %c0_32, %c0_33, %c0_34], %33 {strides = array<i32>} : memref<1x1x8x8xf32, #tpu.memory_space<vmem>>, vector<1x1x8x8xf32>,
    return
  }
  func.func @transform_0(%arg0: i32, %arg1: i32, %arg2: i32) -> (i32, i32, i32) {
    %c0_i32 = arith.constant 0 : i32
    %c0_i32_0 = arith.constant 0 : i32
    return %arg0, %arg2, %c0_i32 : i32, i32, i32
  }
  func.func @transform_1(%arg0: i32, %arg1: i32, %arg2: i32) -> (i32, i32, i32) {
    %c0_i32 = arith.constant 0 : i32
    %c0_i32_0 = arith.constant 0 : i32
    %c0_i32_1 = arith.constant 0 : i32
    return %arg1, %c0_i32, %c0_i32_0 : i32, i32, i32
  }
  func.func @transform_2(%arg0: i32, %arg1: i32, %arg2: i32) -> (i32, i32, i32) {
    %c0_i32 = arith.constant 0 : i32
    %c0_i32_0 = arith.constant 0 : i32
    %c0_i32_1 = arith.constant 0 : i32
    return %arg1, %c0_i32, %c0_i32_0 : i32, i32, i32
  }
  func.func @transform_3(%arg0: i32, %arg1: i32, %arg2: i32) -> (i32, i32, i32) {
    %c0_i32 = arith.constant 0 : i32
    %c0_i32_0 = arith.constant 0 : i32
    %c0_i32_1 = arith.constant 0 : i32
    return %arg1, %c0_i32, %c0_i32_0 : i32, i32, i32
  }
  func.func @transform_4(%arg0: i32, %arg1: i32, %arg2: i32) -> (i32, i32, i32) {
    %c0_i32 = arith.constant 0 : i32
    %c0_i32_0 = arith.constant 0 : i32
    %c0_i32_1 = arith.constant 0 : i32
    return %arg1, %c0_i32, %c0_i32_0 : i32, i32, i32
  }
  func.func @transform_5(%arg0: i32, %arg1: i32, %arg2: i32) -> (i32, i32, i32) {
    %c0_i32 = arith.constant 0 : i32
    %c0_i32_0 = arith.constant 0 : i32
    %c0_i32_1 = arith.constant 0 : i32
    return %arg1, %c0_i32, %c0_i32_0 : i32, i32, i32
  }
  func.func @transform_6(%arg0: i32, %arg1: i32, %arg2: i32) -> (i32, i32, i32) {
    %c0_i32 = arith.constant 0 : i32
    %c0_i32_0 = arith.constant 0 : i32
    %c0_i32_1 = arith.constant 0 : i32
    return %arg1, %c0_i32, %c0_i32_0 : i32, i32, i32
  }
  func.func @transform_7(%arg0: i32, %arg1: i32, %arg2: i32) -> (i32, i32, i32, i32) {
    %c0_i32 = arith.constant 0 : i32
    %c0_i32_0 = arith.constant 0 : i32
    return %arg0, %arg1, %arg2, %c0_i32 : i32, i32, i32, i32
  }
  func.func @transform_8(%arg0: i32, %arg1: i32, %arg2: i32) -> (i32, i32, i32, i32) {
    %c0_i32 = arith.constant 0 : i32
    %c0_i32_0 = arith.constant 0 : i32
    return %arg0, %arg1, %arg2, %c0_i32 : i32, i32, i32, i32
  }
  func.func @transform_9(%arg0: i32, %arg1: i32, %arg2: i32) -> (i32, i32, i32, i32) {
    %c0_i32 = arith.constant 0 : i32
    %c0_i32_0 = arith.constant 0 : i32
    return %arg0, %arg1, %arg2, %c0_i32 : i32, i32, i32, i32
  }
}

</mosaic_0001>

<bundles_post_ra>
// kernel: tpu_custom_call.1
= control target key start
LH: loop header
LB: loop body
LE: loop exit
PB: predicated region body
PF: predicated region fallthrough
CT: control target
= control target key end

     0   :  { %s2596_s0 = inlined_call_operand.hbm [shape: f32[2,8,32], index: 0, kind: input, shape index: {}]   ;;  %s2597_s1 = inlined_call_operand.hbm [shape: f32[4,32,8], index: 1, kind: input, shape index: {}]   ;;  %s2598_s2 = inlined_call_operand.hbm [shape: f32[4,32,8], index: 2, kind: input, shape index: {}]   ;;  %s2599_s3 = inlined_call_operand.hbm [shape: f32[4,32,8], index: 3, kind: input, shape index: {}]   ;;  %s2600_s4 = inlined_call_operand.hbm [shape: f32[4,1,8], index: 4, kind: input, shape index: {}]   ;;  %s2601_s5 = inlined_call_operand.hbm [shape: f32[4,1,8], index: 5, kind: input, shape index: {}]   ;;  %s2602_s6 = inlined_call_operand.hbm [shape: f32[4,1,8], index: 6, kind: input, shape index: {}]   ;;  %s2603_s7 = inlined_call_operand.hbm [shape: f32[2,4,8,8], index: 7, kind: output, shape index: {0}]   ;;  %s2604_s8 = inlined_call_operand.hbm [shape: f32[2,4,8,8], index: 8, kind: output, shape index: {1}]   ;;  %s2605_s9 = inlined_call_operand.hbm [shape: f32[2,4,8,8], index: 9, kind: output, shape index: {2}]  }
   0x1   :  { %2640 = sst [smem:[#allocation42_spill]] %s2596_s0 }
   0x2   :  { %2641 = sst [smem:[#allocation43_spill]] %s2597_s1 }
   0x3   :  { %2642 = sst [smem:[#allocation44_spill]] %s2598_s2 }
   0x4   :  { %2643 = sst [smem:[#allocation45_spill]] %s2599_s3 }
   0x5   :  { %2644 = sst [smem:[#allocation46_spill]] %s2600_s4 }
   0x6   :  { %2645 = sst [smem:[#allocation47_spill]] %s2601_s5 }
   0x7   :  { %2646 = sst [smem:[#allocation48_spill]] %s2602_s6 }
   0x8   :  { %2647 = sst [smem:[#allocation49_spill]] %s2603_s7 }
   0x9   :  { %2648 = sst [smem:[#allocation50_spill]] %s2604_s8 }
   0xa   :  { %2649 = sst [smem:[#allocation51_spill]] %s2605_s9 }
   0xb   :  { %15 = vsyncpa [#allocation3], 0 }
   0xc   :  { %17 = vsyncpa [#allocation3 + $0x1], 0 }
   0xd   :  { %18 = vsyncpa [#allocation6], 0 }
   0xe   :  { %20 = vsyncpa [#allocation6 + $0x1], 0 }
   0xf   :  { %21 = vsyncpa [#allocation9], 0 }
  0x10   :  { %23 = vsyncpa [#allocation9 + $0x1], 0 }
  0x11   :  { %24 = vsyncpa [#allocation12], 0 }
  0x12   :  { %26 = vsyncpa [#allocation12 + $0x1], 0 }
  0x13   :  { %27 = vsyncpa [#allocation4], 0 }
  0x14   :  { %29 = vsyncpa [#allocation4 + $0x1], 0 }
  0x15   :  { %30 = vsyncpa [#allocation16], 0 }
  0x16   :  { %32 = vsyncpa [#allocation16 + $0x1], 0  ;;  %s1978_s30 = smov 0   ;;  %s1980_s10 = smov 0  }
  0x17   :  { %s1982_s11 = smov 0   ;;  %s1984_s12 = smov 0  }
  0x18   :  { %s1986_s13 = smov 0   ;;  %s1988_s14 = smov 0  }
  0x19   :  { %s1990_s15 = smov 0   ;;  %s1992_s16 = smov 0  }
  0x1a   :  { %s1994_s17 = smov 0   ;;  %s1996_s18 = smov 0  }
  0x1b   :  { %s1998_s19 = smov 0   ;;  %s2000_s20 = smov 0  }
  0x1c   :  { %s2002_s21 = smov 0   ;;  %s2004_s22 = smov 0  }
  0x1d LB: > { %2650 = sst [smem:[#allocation24_spill]] %s1859_s30  ;;  %p2613_p0 = scmp.eq.s32.totalorder %s1911_s22, 0  ;;  %s1911_s22 = sphi %s2004_s22, %s38_s22   ;;  %s1907_s21 = sphi %s2002_s21, %s2742_s21   ;;  %s1903_s20 = sphi %s2000_s20, %s2741_s20   ;;  %s1899_s19 = sphi %s1998_s19, %s2730_s19   ;;  %s1895_s18 = sphi %s1996_s18, %s2740_s18   ;;  %s1891_s17 = sphi %s1994_s17, %s2728_s17   ;;  %s1887_s16 = sphi %s1992_s16, %s2739_s16   ;;  %s1883_s15 = sphi %s1990_s15, %s2738_s15   ;;  %s1879_s14 = sphi %s1988_s14, %s2726_s14   ;;  %s1875_s13 = sphi %s1986_s13, %s2737_s13   ;;  %s1871_s12 = sphi %s1984_s12, %s2724_s12   ;;  %s1867_s11 = sphi %s1982_s11, %s2736_s11   ;;  %s1863_s10 = sphi %s1980_s10, %s2735_s10   ;;  %s1859_s30 = sphi %s1978_s30, %s2734_s30  }
  0x1e   : > { %2651 = sst [smem:[#allocation25_spill]] %s1867_s11  ;;  %p99_p1 = scmp.ne.s32.totalorder %s1879_s14, %s1875_s13 }
  0x1f   : > { %2652 = sst [smem:[#allocation26_spill]] %s1875_s13  ;;  %p2612_p2 = scmp.lt.s32.totalorder %s1911_s22, 8 }
  0x20   : > { %2653 = sst [smem:[#allocation27_spill]] %s1879_s14  ;;  %p101_p3 = por %p99_p1, %p2613_p0 }
  0x21   : > { %2654 = sst [smem:[#allocation28_spill]] %s1891_s17  ;;  %s2055_s23 = sand.u32 1, %s1911_s22  }
  0x22   : > { %2655 = sst [smem:[#allocation29_spill]] %s1895_s18  ;;  %s2058_s24 = sand.u32 1, %s1879_s14  }
  0x23   : > { %2656 = sst [smem:[#allocation30_spill]] %s1899_s19  ;;  %s2061_s25 = sshll.u32 %s2058_s24, 5 }
  0x24   : > { %2657 = sst [smem:[#allocation31_spill]] %s1903_s20  ;;  %s2064_s26 = sshll.u32 %s1903_s20, 9 }
  0x25   : > { %2658 = sst [smem:[#allocation32_spill]] %s1907_s21  ;;  %s2660_s1 = sld [smem:[#allocation43_spill]] }
  0x26   : > { %2659 = sst [smem:[#allocation33_spill]] %s2061_s25  ;;  %s372_s9 = scalar_lea.vmem [#allocation5], %s2061_s25 }
  0x27   : > { %s379_s7 = sshll.u32 %s372_s9, 4  ;;  %p2075_p4 = pnand %p2612_p2, %p101_p3  ;;  %s2079_s7 = int_to_ptr.vmem [resolvable:$true] %s379_s7 }
  0x29   : > { %s2661_s8 = scalar_select %p2075_p4, 1, 0 }
  0x2a   : > { %p2086_p6 = pneg %p2075_p4 }
  0x2b   : > { %s2070_s29 = scalar_lea.hbm %s2660_s1, %s2064_s26  ;;  %s1488_s6 = scalar_lea.hbm %s2660_s1, 2048 }
  0x2c   : > { %s1483_s19 = scalar_lea.hbm %s2070_s29, 512  ;;  %p1489_p9 = scmp.lt.u32.totalorder %s2070_s29, %s2660_s1 }
  0x2d   : > { %p1484_p5 = scmp.ne.s32.totalorder %s2070_s29, %s1483_s19  ;;  %p1490_p10 = scmp.lt.u32.totalorder %s1488_s6, %s1483_s19 }
  0x2e   : > { %p1492_p12 = scmp.lt.u32.totalorder %s1483_s19, %s2070_s29 }
  0x2f   : > { %p1486_p7 = pnand %p2086_p6, %p1484_p5  ;;  %p1491_p11 = por %p1490_p10, %p1489_p9 }
  0x31   : > { %p1487_p8 = pneg %p1486_p7  ;;  %p1493_p13 = por %p1492_p12, %p1491_p11 }
  0x33   : > { %p1494_p1 = pnand %p1493_p13, %p1487_p8 }
  0x35   : > { %1497 = shalt.err (!%p1494_p1)
}
  0x36   : > { %s1498_s18 = scalar_lea.vmem %s2079_s7, 512  ;;  %s1913_s9 = smov [#allocation5]  }
  0x37   : > { %p1499_p3 = scmp.ne.s32.totalorder %s2079_s7, %s1498_s18  ;;  %s1503_s28 = sshll.u32 %s1913_s9, 4  ;;  %s1504_s28 = int_to_ptr.vmem [resolvable:$false] %s1503_s28 }
  0x38   : > { %s1505_s2 = scalar_lea.vmem %s1504_s28, 1024  ;;  %p1506_p2 = scmp.lt.s32.totalorder %s2079_s7, %s1504_s28 }
  0x39   : > { %p1501_p5 = pnand %p1499_p3, %p2086_p6  ;;  %p1507_p0 = scmp.lt.s32.totalorder %s1505_s2, %s1498_s18 }
  0x3b   : > { %p1502_p7 = pneg %p1501_p5  ;;  %p1508_p9 = por %p1507_p0, %p1506_p2 }
  0x3d   : > { %p1509_p10 = pnand %p1508_p9, %p1502_p7 }
  0x3f   : > { %1512 = shalt.err (!%p1509_p10)
}
  0x40   : > { %s2615_s4 = smov 128   ;;  %s2617_s6 = smov 8  }
  0x41   : > { %s2663_s18 = scalar_lea.sflag [#allocation6], %s2055_s23  ;;  %p1218_p0 = scmp.ge.s32.totalorder %s1911_s22, 1 }
  0x42   : > { %1338 = dma.hbm_to_vmem [thread:$0]  (!%p2075_p4), %s2070_s29, 512, %s2079_s7, %s2663_s18, %s2615_s4, %s2615_s4, %s2617_s6  }
  0x43   : > { %p480_p2 = scmp.lt.s32.totalorder %s1911_s22, 9  ;;  %s2666_s3 = sld [smem:[#allocation45_spill]] }
  0x44   : > { %s414_s1 = scalar_lea.vmem [#allocation8], %s2061_s25  ;;  %s2128_s30 = sshll.u32 %s1903_s20, 4 }
  0x45   : > { %p2116_p8 = pnand %p1218_p0, %p480_p2  ;;  %s421_s0 = sshll.u32 %s414_s1, 4  ;;  %s2130_s0 = int_to_ptr.vmem [resolvable:$true] %s421_s0 }
  0x46   : > { %s2621_s7 = scalar_lea.sflag [#allocation9], %s2055_s23 }
  0x47   : > { %s2664_s19 = scalar_select %p2116_p8, 1, 0 }
  0x49   : > { %2665 = sst [smem:[#allocation34_spill]] %s2664_s19  ;;  %s2124_s2 = scalar_lea.hbm %s2666_s3, %s2064_s26 }
  0x4a   : > { %s1513_s29 = scalar_lea.hbm %s2124_s2, 512  ;;  %s1518_s28 = scalar_lea.hbm %s2666_s3, 2048 }
  0x4b   : > { %p1514_p11 = scmp.ne.s32.totalorder %s2124_s2, %s1513_s29  ;;  %p1519_p1 = scmp.lt.u32.totalorder %s2124_s2, %s2666_s3 }
  0x4c   : > { %p1520_p3 = scmp.lt.u32.totalorder %s1518_s28, %s1513_s29  ;;  %p1522_p7 = scmp.lt.u32.totalorder %s1513_s29, %s2124_s2 }
  0x4d   : > { %p1516_p12 = pnand %p1514_p11, %p2086_p6 }
  0x4e   : > { %p1521_p5 = por %p1520_p3, %p1519_p1 }
  0x4f   : > { %p1517_p13 = pneg %p1516_p12 }
  0x50   : > { %p1523_p9 = por %p1522_p7, %p1521_p5 }
  0x52   : > { %p1524_p10 = pnand %p1523_p9, %p1517_p13 }
  0x54   : > { %1527 = shalt.err (!%p1524_p10)
}
  0x55   : > { %s1528_s1 = scalar_lea.vmem %s2130_s0, 512  ;;  %s1916_s18 = smov [#allocation8]  }
  0x56   : > { %p1529_p0 = scmp.ne.s32.totalorder %s2130_s0, %s1528_s1  ;;  %s1533_s9 = sshll.u32 %s1916_s18, 4  ;;  %s1534_s9 = int_to_ptr.vmem [resolvable:$false] %s1533_s9 }
  0x57   : > { %s1535_s4 = scalar_lea.vmem %s1534_s9, 1024  ;;  %p1536_p12 = scmp.lt.s32.totalorder %s2130_s0, %s1534_s9 }
  0x58   : > { %p1531_p2 = pnand %p1529_p0, %p2086_p6  ;;  %p1537_p8 = scmp.lt.s32.totalorder %s1535_s4, %s1528_s1 }
  0x5a   : > { %p1532_p11 = pneg %p1531_p2  ;;  %p1538_p1 = por %p1537_p8, %p1536_p12 }
  0x5c   : > { %p1539_p3 = pnand %p1538_p1, %p1532_p11 }
  0x5e   : > { %1542 = shalt.err (!%p1539_p3)
}
  0x5f   : > { %s2667_s6 = smov 8   ;;  %s2668_s29 = smov 128  }
  0x60   : > { %1344 = dma.hbm_to_vmem [thread:$0]  (!%p2075_p4), %s2124_s2, 512, %s2130_s0, %s2621_s7, %s2668_s29, %s2668_s29, %s2667_s6  }
  0x61   : > { %s2669_s5 = sld [smem:[#allocation47_spill]]  ;;  %s451_s9 = scalar_lea.vmem [#allocation11], %s2058_s24 }
  0x62   : > { %s458_s4 = sshll.u32 %s451_s9, 4  ;;  %s459_s4 = int_to_ptr.vmem [resolvable:$true] %s458_s4 }
  0x67   : > { %s2163_s1 = scalar_lea.hbm %s2669_s5, %s2128_s30  ;;  %s1548_s2 = scalar_lea.hbm %s2669_s5, 64 }
  0x68   : > { %s1543_s19 = scalar_lea.hbm %s2163_s1, 16  ;;  %p1549_p7 = scmp.lt.u32.totalorder %s2163_s1, %s2669_s5 }
  0x69   : > { %p1544_p8 = scmp.ne.s32.totalorder %s2163_s1, %s1543_s19  ;;  %p1550_p9 = scmp.lt.u32.totalorder %s1548_s2, %s1543_s19 }
  0x6a   : > { %p1552_p0 = scmp.lt.u32.totalorder %s1543_s19, %s2163_s1 }
  0x6b   : > { %p1546_p13 = pnand %p1544_p8, %p2086_p6  ;;  %p1551_p10 = por %p1550_p9, %p1549_p7 }
  0x6d   : > { %p1547_p5 = pneg %p1546_p13  ;;  %p1553_p2 = por %p1552_p0, %p1551_p10 }
  0x6f   : > { %p1554_p11 = pnand %p1553_p2, %p1547_p5 }
  0x71   : > { %1557 = shalt.err (!%p1554_p11)
}
  0x72   : > { %s1558_s9 = scalar_lea.vmem %s459_s4, 16  ;;  %s1917_s7 = smov [#allocation11]  }
  0x73   : > { %p1559_p12 = scmp.ne.s32.totalorder %s459_s4, %s1558_s9  ;;  %s1563_s3 = sshll.u32 %s1917_s7, 4  ;;  %s1564_s3 = int_to_ptr.vmem [resolvable:$false] %s1563_s3 }
  0x74   : > { %s1565_s25 = scalar_lea.vmem %s1564_s3, 32  ;;  %p1566_p8 = scmp.lt.s32.totalorder %s459_s4, %s1564_s3 }
  0x75   : > { %p1561_p1 = pnand %p1559_p12, %p2086_p6  ;;  %p1567_p13 = scmp.lt.s32.totalorder %s1565_s25, %s1558_s9 }
  0x77   : > { %p1562_p3 = pneg %p1561_p1  ;;  %p1568_p4 = por %p1567_p13, %p1566_p8 }
  0x79   : > { %p1569_p7 = pnand %p1568_p4, %p1562_p3 }
  0x7b   : > { %1572 = shalt.err (!%p1569_p7)
}
  0x7c   : > { %p2670_p9 = scmp.ne.s32.totalorder %s2661_s8, 0  ;;  %s2671_s19 = scalar_lea.sflag [#allocation12], %s2055_s23 }
  0x7d   : > { %s2187_s3 = sadd.s32 4294967295, %s1911_s22   ;;  %s53_s0 = sadd.s32 1, %s1903_s20 }
  0x7e   : > { %1350 = dma.hbm_to_vmem [thread:$0]  (!%p2670_p9), %s2163_s1, 16, %s459_s4, %s2671_s19  }
  0x7f   : > { %s57_s2 = sadd.s32 1, %s1907_s21  ;;  %p55_p4 = scmp.ge.s32.totalorder %s53_s0, 4 }
  0x80   : > { %s66_s28 = sadd.s32 1, %s1891_s17  ;;  %p73_p5 = scmp.ne.s32.totalorder %s1891_s17, %s1887_s16 }
  0x81   : > { %p79_p10 = scmp.ne.s32.totalorder %s1887_s16, %s1883_s15  ;;  %s2744_s0 = smov (%p55_p4, %s53_s0), 0 }
  0x82   : > { %2672 = sst [smem:[#allocation35_spill]] %s2744_s0  ;;  %s2746_s2 = smov (!%p55_p4, %s57_s2), %s1907_s21 }
  0x83   : > { %p2673_p0 = scmp.eq.s32.totalorder %s1911_s22, 0  ;;  %p80_p11 = scmp.eq.s32.totalorder %s2187_s3, 0 }
  0x84   : > { %p59_p12 = scmp.ge.s32.totalorder %s2746_s2, 2  ;;  %s89_s4 = ssub.s32 %s1903_s20, %s2744_s0 }
  0x85   : > { %p2202_p2 = por %p2673_p0, %p73_p5  ;;  %s2675_s18 = sld [smem:[#allocation24_spill]] }
  0x86   : > { %p2209_p1 = por %p80_p11, %p79_p10  ;;  %p90_p3 = scmp.eq.s32.totalorder %s89_s4, 0 }
  0x87   : > { %s2748_s2 = smov (%p59_p12, %s2746_s2), 0  ;;  %s92_s9 = sadd.s32 1, %s1879_s14 }
  0x88   : > { %s2676_s15 = scalar_select %p2209_p1, 1, 0 }
  0x89   : > { %2677 = sst [smem:[#allocation36_spill]] %s2748_s2  ;;  %p105_p8 = scmp.ne.s32.totalorder %s1875_s13, %s1871_s12 }
  0x8a   : > { %s61_s25 = ssub.s32 %s1907_s21, %s2748_s2  ;;  %s252_s19 = sadd.s32 1, %s1867_s11 }
  0x8b   : > { %p64_p13 = scmp.eq.s32.totalorder %s61_s25, 0  ;;  %p2221_p7 = por %p105_p8, %p80_p11 }
  0x8c   : > { %s2226_s5 = scalar_select %p90_p3, %s1879_s14, %s92_s9  }
  0x8d   : > { %s2678_s7 = scalar_select %p2221_p7, 1, 0 }
  0x8e   : > { %2680 = sst [smem:[#allocation38_spill]] %s2226_s5  ;;  %s247_s20 = sor.u32 %s89_s4, %s61_s25 }
  0x8f   : > { %2679 = sst [smem:[#allocation37_spill]] %s2678_s7  ;;  %p262_p4 = scmp.ne.s32.totalorder %s1867_s11, %s1863_s10 }
  0x90   : > { %s2229_s0 = scalar_select %p64_p13, %s1891_s17, %s66_s28  }
  0x91   : > { %p250_p5 = scmp.eq.s32.totalorder %s247_s20, 0  ;;  %p263_p10 = scmp.eq.s32.totalorder %s2187_s3, 7 }
  0x92   : > { %2681 = sst [smem:[#allocation39_spill]] %s2229_s0  ;;  %p268_p0 = scmp.ne.s32.totalorder %s1863_s10, %s2675_s18 }
  0x93   : > { %s2682_s12 = sadd.s32 4294967294, %s1911_s22   ;;  %p2241_p11 = por %p263_p10, %p262_p4 }
  0x94   : > { %p269_p12 = scmp.eq.s32.totalorder %s2682_s12, 7  ;;  %s349_s28 = sand.u32 1, %s1891_s17  }
  0x95   : > { %s2239_s2 = scalar_select %p250_p5, %s1867_s11, %s252_s19  }
  0x96   : > { %s2684_s13 = scalar_select %p2241_p11, 1, 0 }
  0x97   : > { %2683 = sst [smem:[#allocation40_spill]] %s2239_s2  ;;  %p2245_p3 = por %p269_p12, %p268_p0 }
  0x98   : > { %s1205_s0 = sshll.u32 %s1907_s21, 7  ;;  %s1204_s4 = sshll.u32 %s349_s28, 3 }
  0x99   : > { %s2685_s9 = scalar_select %p2245_p3, 1, 0 }
  0x9a   : > { %s2687_s20 = sld [smem:[#allocation42_spill]]  ;;  %s353_s18 = scalar_lea.vmem [#allocation2], %s1204_s4 }
  0x9b   : > { %2686 = sst [smem:[#allocation41_spill]] %s2685_s9  ;;  %s361_s19 = sshll.u32 %s353_s18, 4  ;;  %s2264_s19 = int_to_ptr.vmem [resolvable:$true] %s361_s19 }
  0x9c   : > { %p2689_p8 = scmp.lt.s32.totalorder %s1911_s22, 8 }
  0x9e   : > { %p2260_p13 = pnand %p2689_p8, %p2202_p2 }
  0xa0   : > { %s2688_s7 = smov %s2687_s20  ;;  %s2254_s14 = scalar_lea.hbm %s2687_s20, %s1205_s0 }
  0xa1   : > { %s2691_s0 = sld [smem:[#allocation44_spill]]  ;;  %s350_s20 = scalar_lea.sflag [#allocation3], %s349_s28 }
  0xa2   : > { %s1573_s17 = scalar_lea.hbm %s2254_s14, 128  ;;  %p1575_p5 = pneg %p2260_p13 }
  0xa3   : > { %p1574_p4 = scmp.ne.s32.totalorder %s2254_s14, %s1573_s17  ;;  %s1578_s18 = scalar_lea.hbm %s2688_s7, 256 }
  0xa4   : > { %p1579_p0 = scmp.lt.u32.totalorder %s2254_s14, %s2688_s7  ;;  %p1580_p12 = scmp.lt.u32.totalorder %s1578_s18, %s1573_s17 }
  0xa5   : > { %p1576_p2 = pnand %p1575_p5, %p1574_p4  ;;  %p1582_p3 = scmp.lt.u32.totalorder %s1573_s17, %s2254_s14 }
  0xa6   : > { %p1581_p8 = por %p1580_p12, %p1579_p0 }
  0xa7   : > { %s2270_s25 = scalar_lea.hbm %s2691_s0, %s2064_s26  ;;  %p1577_p10 = pneg %p1576_p2 }
  0xa8   : > { %p1583_p11 = por %p1582_p3, %p1581_p8 }
  0xaa   : > { %p1584_p7 = pnand %p1583_p11, %p1577_p10 }
  0xac   : > { %1587 = shalt.err (!%p1584_p7)
}
  0xad   : > { %s1588_s21 = scalar_lea.vmem %s2264_s19, 128  ;;  %s1918_s26 = smov [#allocation2]  }
  0xae   : > { %p1589_p4 = scmp.ne.s32.totalorder %s2264_s19, %s1588_s21  ;;  %s1593_s28 = sshll.u32 %s1918_s26, 4  ;;  %s1594_s28 = int_to_ptr.vmem [resolvable:$false] %s1593_s28 }
  0xaf   : > { %s1595_s11 = scalar_lea.vmem %s1594_s28, 256  ;;  %p1596_p9 = scmp.lt.s32.totalorder %s2264_s19, %s1594_s28 }
  0xb0   : > { %p1591_p2 = pnand %p1589_p4, %p1575_p5  ;;  %p1597_p0 = scmp.lt.s32.totalorder %s1595_s11, %s1588_s21 }
  0xb2   : > { %p1592_p1 = pneg %p1591_p2  ;;  %p1598_p12 = por %p1597_p0, %p1596_p9 }
  0xb4   : > { %p1599_p3 = pnand %p1598_p12, %p1592_p1 }
  0xb6   : > { %1602 = shalt.err (!%p1599_p3)
}
  0xb7   : > { %s2692_s17 = sld [smem:[#allocation33_spill]]  ;;  %s2693_s18 = sld [smem:[#allocation46_spill]] }
  0xb8   : > { %1335 = dma.hbm_to_vmem [thread:$0]  (!%p2260_p13), %s2254_s14, 128, %s2264_s19, %s350_s20  }
  0xb9   : > { %s1603_s12 = scalar_lea.hbm %s2270_s25, 512  ;;  %s1608_s7 = scalar_lea.hbm %s2691_s0, 2048 }
  0xba   : > { %p1604_p9 = scmp.ne.s32.totalorder %s2270_s25, %s1603_s12  ;;  %p1609_p11 = scmp.lt.u32.totalorder %s2270_s25, %s2691_s0 }
  0xbb   : > { %p1610_p13 = scmp.lt.u32.totalorder %s1608_s7, %s1603_s12  ;;  %p1612_p10 = scmp.lt.u32.totalorder %s1603_s12, %s2270_s25 }
  0xbc   : > { %p1606_p1 = pnand %p1604_p9, %p2086_p6 }
  0xbd   : > { %s393_s2 = scalar_lea.vmem [#allocation7], %s2692_s17  ;;  %s2694_s26 = smov %s2693_s18 }
  0xbe   : > { %s400_s5 = sshll.u32 %s393_s2, 4  ;;  %s2304_s21 = scalar_lea.hbm %s2693_s18, %s2128_s30  ;;  %s2298_s5 = int_to_ptr.vmem [resolvable:$true] %s400_s5 }
  0xbf   : > { %p1607_p7 = pneg %p1606_p1  ;;  %p1611_p5 = por %p1610_p13, %p1609_p11 }
  0xc1   : > { %p1613_p8 = por %p1612_p10, %p1611_p5 }
  0xc3   : > { %p1614_p4 = pnand %p1613_p8, %p1607_p7 }
  0xc5   : > { %1617 = shalt.err (!%p1614_p4)
}
  0xc6   : > { %s1618_s19 = scalar_lea.vmem %s2298_s5, 512  ;;  %s1919_s20 = smov [#allocation7]  }
  0xc7   : > { %p1619_p2 = scmp.ne.s32.totalorder %s2298_s5, %s1618_s19  ;;  %s1623_s17 = sshll.u32 %s1919_s20, 4  ;;  %s1624_s17 = int_to_ptr.vmem [resolvable:$false] %s1623_s17 }
  0xc8   : > { %s1625_s9 = scalar_lea.vmem %s1624_s17, 1024  ;;  %p1626_p3 = scmp.lt.s32.totalorder %s2298_s5, %s1624_s17 }
  0xc9   : > { %p1621_p0 = pnand %p1619_p2, %p2086_p6  ;;  %p1627_p9 = scmp.lt.s32.totalorder %s1625_s9, %s1618_s19 }
  0xcb   : > { %p1622_p12 = pneg %p1621_p0  ;;  %p1628_p1 = por %p1627_p9, %p1626_p3 }
  0xcd   : > { %p1629_p11 = pnand %p1628_p1, %p1622_p12 }
  0xcf   : > { %1632 = shalt.err (!%p1629_p11)
}
  0xd0   : > { %p2695_p7 = scmp.ne.s32.totalorder %s2661_s8, 0  ;;  %s2696_s7 = scalar_lea.sflag [#allocation6], %s2055_s23 }
  0xd1   : > { %s434_s2 = scalar_lea.vmem [#allocation10], %s2058_s24  ;;  %s2697_s12 = sld [smem:[#allocation48_spill]] }
  0xd2   : > { %1341 = dma.hbm_to_vmem [thread:$0]  (!%p2695_p7), %s2270_s25, 512, %s2298_s5, %s2696_s7, %s2668_s29, %s2668_s29, %s2667_s6  }
  0xd3   : > { %s441_s1 = sshll.u32 %s434_s2, 4  ;;  %s1633_s14 = scalar_lea.hbm %s2304_s21, 16  ;;  %s442_s1 = int_to_ptr.vmem [resolvable:$true] %s441_s1 }
  0xd4   : > { %p1634_p13 = scmp.ne.s32.totalorder %s2304_s21, %s1633_s14  ;;  %s1638_s17 = scalar_lea.hbm %s2694_s26, 64 }
  0xd5   : > { %p1639_p8 = scmp.lt.u32.totalorder %s2304_s21, %s2694_s26  ;;  %p1640_p4 = scmp.lt.u32.totalorder %s1638_s17, %s1633_s14 }
  0xd6   : > { %p1636_p5 = pnand %p1634_p13, %p2086_p6  ;;  %p1642_p0 = scmp.lt.u32.totalorder %s1633_s14, %s2304_s21 }
  0xd7   : > { %s2698_s28 = smov %s2697_s12  ;;  %s2337_s11 = scalar_lea.hbm %s2697_s12, %s2128_s30 }
  0xd8   : > { %p1637_p10 = pneg %p1636_p5  ;;  %p1641_p2 = por %p1640_p4, %p1639_p8 }
  0xda   : > { %p1643_p12 = por %p1642_p0, %p1641_p2 }
  0xdc   : > { %p1644_p3 = pnand %p1643_p12, %p1637_p10 }
  0xde   : > { %1647 = shalt.err (!%p1644_p3)
}
  0xdf   : > { %s1648_s30 = scalar_lea.vmem %s442_s1, 16  ;;  %s1920_s6 = smov [#allocation10]  }
  0xe0   : > { %p1649_p9 = scmp.ne.s32.totalorder %s442_s1, %s1648_s30  ;;  %s1653_s29 = sshll.u32 %s1920_s6, 4  ;;  %s1654_s29 = int_to_ptr.vmem [resolvable:$false] %s1653_s29 }
  0xe1   : > { %s1655_s25 = scalar_lea.vmem %s1654_s29, 32  ;;  %p1656_p13 = scmp.lt.s32.totalorder %s442_s1, %s1654_s29 }
  0xe2   : > { %p1651_p1 = pnand %p1649_p9, %p2086_p6  ;;  %p1657_p5 = scmp.lt.s32.totalorder %s1655_s25, %s1648_s30 }
  0xe4   : > { %p1652_p11 = pneg %p1651_p1  ;;  %p1658_p7 = por %p1657_p5, %p1656_p13 }
  0xe6   : > { %p1659_p4 = pnand %p1658_p7, %p1652_p11 }
  0xe8   : > { %1662 = shalt.err (!%p1659_p4)
}
  0xe9   : > { %p2699_p8 = scmp.ne.s32.totalorder %s2661_s8, 0  ;;  %s2700_s0 = scalar_lea.sflag [#allocation9], %s2055_s23 }
  0xea   : > { %s468_s5 = scalar_lea.vmem [#allocation13], %s2058_s24  ;;  %s1663_s2 = scalar_lea.hbm %s2337_s11, 16 }
  0xeb   : > { %1347 = dma.hbm_to_vmem [thread:$0]  (!%p2699_p8), %s2304_s21, 16, %s442_s1, %s2700_s0  }
  0xec   : > { %s475_s7 = sshll.u32 %s468_s5, 4  ;;  %p1664_p10 = scmp.ne.s32.totalorder %s2337_s11, %s1663_s2  ;;  %s476_s7 = int_to_ptr.vmem [resolvable:$true] %s475_s7 }
  0xed   : > { %s1668_s12 = scalar_lea.hbm %s2698_s28, 64  ;;  %p1669_p0 = scmp.lt.u32.totalorder %s2337_s11, %s2698_s28 }
  0xee   : > { %p1666_p7 = pnand %p1664_p10, %p2086_p6  ;;  %p1670_p12 = scmp.lt.u32.totalorder %s1668_s12, %s1663_s2 }
  0xef   : > { %p1672_p9 = scmp.lt.u32.totalorder %s1663_s2, %s2337_s11 }
  0xf0   : > { %p1667_p2 = pneg %p1666_p7  ;;  %p1671_p3 = por %p1670_p12, %p1669_p0 }
  0xf2   : > { %p1673_p1 = por %p1672_p9, %p1671_p3 }
  0xf4   : > { %p1674_p11 = pnand %p1673_p1, %p1667_p2 }
  0xf6   : > { %1677 = shalt.err (!%p1674_p11)
}
  0xf7   : > { %s1678_s24 = scalar_lea.vmem %s476_s7, 16  ;;  %s1921_s21 = smov [#allocation13]  }
  0xf8   : > { %p1679_p13 = scmp.ne.s32.totalorder %s476_s7, %s1678_s24  ;;  %s1683_s1 = sshll.u32 %s1921_s21, 4  ;;  %s1684_s1 = int_to_ptr.vmem [resolvable:$false] %s1683_s1 }
  0xf9   : > { %s1685_s20 = scalar_lea.vmem %s1684_s1, 32  ;;  %p1686_p10 = scmp.lt.s32.totalorder %s476_s7, %s1684_s1 }
  0xfa   : > { %p1681_p5 = pnand %p1679_p13, %p2086_p6  ;;  %p1687_p7 = scmp.lt.s32.totalorder %s1685_s20, %s1678_s24 }
  0xfc   : > { %p1682_p4 = pneg %p1681_p5  ;;  %p1688_p8 = por %p1687_p7, %p1686_p10 }
  0xfe   : > { %p1689_p0 = pnand %p1688_p8, %p1682_p4 }
 0x100   : > { %1692 = shalt.err (!%p1689_p0)
}
 0x101   : > { %p2701_p12 = scmp.ne.s32.totalorder %s2661_s8, 0  ;;  %s2702_s17 = scalar_lea.sflag [#allocation12], %s2055_s23 }
 0x102   : > { %s2703_s9 = sld [smem:[#allocation34_spill]] }
 0x103   : > { %1353 = dma.hbm_to_vmem [thread:$0]  (!%p2701_p12), %s2337_s11, 16, %s476_s7, %s2702_s17  }
 0x108   : > { %p2704_p2 = scmp.ne.s32.totalorder %s2703_s9, 0 }
 0x109   : > { %s486_s27 = sand.u32 (!%p2704_p2), 1, %s1887_s16   ;;  %p2705_p6 = scmp.ne.s32.totalorder (!%p2704_p2), %s2676_s15, 0 }
 0x10a   : > { %484 = sbr.rel (%p2704_p2) target bundleno = 577 (0x241), region = 48  ;;  %s2381_s30 = sshll.u32 (!%p2704_p2), %s486_s27, 3 }
 0x10b   : > { %s487_s6 = scalar_lea.sflag (!%p2704_p2), [#allocation3], %s486_s27  ;;  %s490_s29 = scalar_lea.vmem (!%p2704_p2), [#allocation2], %s2381_s30 }
 0x111   : > { %1834 = dma.done.wait (%p2705_p6), %s487_s6, 128  }
 0x112   : > { %1836 = vsyncadd (%p2705_p6), %s487_s6, 4294967168  ;;  %s2706_s8 = sld [smem:[#allocation26_spill]]  ;;  %s2707_s23 = sld [smem:[#allocation37_spill]] }
 0x113   : > { %s2389_s11 = sand.u32 1, %s2187_s3  }
 0x114   : > { %s496_s5 = scalar_lea.sflag [#allocation6], %s2389_s11 }
 0x118   : > { %s2392_s25 = sand.u32 1, %s2706_s8   ;;  %p2708_p8 = scmp.ne.s32.totalorder %s2707_s23, 0 }
 0x119   : > { %s1220_s0 = sshll.u32 %s2392_s25, 5 }
 0x11a   : > { %s499_s7 = scalar_lea.vmem [#allocation5], %s1220_s0 }
 0x11b   : > { %1838 = dma.done.wait (%p2708_p8), %s496_s5, 1024  }
 0x11c   : > { %1840 = vsyncadd (%p2708_p8), %s496_s5, 4294966272  ;;  %s508_s15 = scalar_lea.vmem [#allocation7], %s1220_s0  ;;  %s514_s2 = scalar_lea.sflag [#allocation9], %s2389_s11 }
 0x11d   : > { %s2401_s4 = scalar_lea.vmem [#allocation8], %s1220_s0 }
 0x11e   : > { %1842 = dma.done.wait (%p2708_p8), %s514_s2, 528  }
 0x11f   : > { %1844 = vsyncadd (%p2708_p8), %s514_s2, 4294966768  ;;  %s525_s3 = scalar_lea.vmem [#allocation10], %s2392_s25  ;;  %s531_s18 = scalar_lea.sflag [#allocation12], %s2389_s11 }
 0x120   : > { %s533_s12 = scalar_lea.vmem [#allocation11], %s2392_s25 }
 0x121   : > { %1846 = dma.done.wait (%p2708_p8), %s531_s18, 32  }
 0x122   : > { %1848 = vsyncadd (%p2708_p8), %s531_s18, 4294967264  ;;  %v1922_v0 = vmov 0.0|0.0   ;;  %vm1923_vm0 = vmmov 0   ;;  %v1924_v1 = vmov 0.0   ;;  %v614_v2 = vld [vmem:[%s499_s7] sm:$0xff]  ;;  %v615_v3 = vld [vmem:[%s499_s7 + $0x8] sm:$0xff] }
 0x123   : > { %1294 = vmatprep.subr.bf16.mxu0 %v1922_v0  ;;  %1300 = vmatprep.subr.bf16.mxu1 %v1922_v0  ;;  %v616_v4 = vld [vmem:[%s499_s7 + $0x10] sm:$0xff]  ;;  %v1295_v5 = vpack.c.bf16 %v615_v3, %v614_v2  ;;  %v617_v6 = vld [vmem:[%s499_s7 + $0x18] sm:$0xff]  ;;  %v699_v7 = vld [vmem:[%s508_s15] sm:$0xff]  ;;  %s2709_s14 = sld [smem:[#allocation30_spill]]  ;;  %vm625_vm1 = vcmask 261120   ;;  %s2710_s19 = sld [smem:[#allocation29_spill]] }
 0x124   : > { %1269 = vmatprep.mubr.msk.f32.mxu0 %vm1923_vm0, %v1924_v1  ;;  %1280 = vmatprep.mubr.msk.f32.mxu1 %vm1923_vm0, %v1924_v1  ;;  %v700_v8 = vld [vmem:[%s508_s15 + $0x8] sm:$0xff]  ;;  %v1298_v10 = vpack.c.bf16 %v617_v6, %v616_v4  ;;  %v701_v11 = vld [vmem:[%s508_s15 + $0x10] sm:$0xff]  ;;  %v702_v12 = vld [vmem:[%s508_s15 + $0x18] sm:$0xff]  ;;  %s596_s24 = sand.u32 1, %s1863_s10   ;;  %s2711_s23 = sld [smem:[#allocation50_spill]]  ;;  %vm862_vm2 = vcmask 64512  }
 0x125   : > { %v1301_v9 = vpack.c.bf16 %v700_v8, %v699_v7  ;;  %1296 = vmatpush3.bf16.msra.mxu0 %v1295_v5  ;;  %v780_v13 = vld [vmem:[%s2401_s4] sm:$0xff]  ;;  %v781_v14 = vld [vmem:[%s2401_s4 + $0x8] sm:$0xff]  ;;  %v1304_v15 = vpack.c.bf16 %v702_v12, %v701_v11  ;;  %v613_v16 = vld [vmem:[%s490_s29] sm:$0xff]  ;;  %s2427_s1 = sshll.u32 %s596_s24, 3  ;;  %s2712_s15 = sld [smem:[#allocation49_spill]] }
 0x126   : > { %1297 = vmatprep.subr.bf16.mxu0 %v1922_v0  ;;  %v1307_v17 = vpack.c.bf16 %v781_v14, %v780_v13  ;;  %v782_v18 = vld [vmem:[%s2401_s4 + $0x10] sm:$0xff]  ;;  %v783_v19 = vld [vmem:[%s2401_s4 + $0x18] sm:$0xff]  ;;  %s605_s9 = scalar_lea.vmem [#allocation15], %s2427_s1  ;;  %s598_s30 = scalar_lea.vmem [#allocation14], %s2427_s1 }
 0x127   : > { %1302 = vmatpush3.bf16.msra.mxu1 %v1301_v9  ;;  %v1310_v20 = vpack.c.bf16 %v783_v19, %v782_v18  ;;  %v1226_v21 = vld [vmem:[%s525_s3] ss:$0 sm:$0xff]  ;;  %s909_s27 = sshll.u32 %s605_s9, 4  ;;  %s893_s6 = sshll.u32 %s598_s30, 4  ;;  %s2446_s27 = int_to_ptr.vmem [resolvable:$true] %s909_s27  ;;  %s2454_s6 = int_to_ptr.vmem [resolvable:$true] %s893_s6 }
 0x128   : > { %1303 = vmatprep.subr.bf16.mxu1 %v1922_v0  ;;  %v1228_v22 = vld [vmem:[%s533_s12] ss:$0 sm:$0xff]  ;;  %s612_s3 = scalar_lea.vmem [#allocation17], %s2427_s1  ;;  %s872_s12 = scalar_lea.sflag [#allocation16], %s2389_s11 }
 0x129   : > { %1299 = vmatpush3.bf16.msra.mxu0 %v1298_v10  ;;  %s1235_s21 = sshll.u32 %s2709_s14, 2  ;;  %s2460_s18 = sshll.u32 %s612_s3, 4  ;;  %s926_s18 = int_to_ptr.vmem [resolvable:$true] %s2460_s18 }
 0x12a   : > { %1306 = vmatprep.subr.bf16.mxu0 %v1922_v0  ;;  %s889_s20 = sadd.s32 %s2710_s19, %s1235_s21  ;;  %s1693_s14 = scalar_lea.vmem %s2446_s27, 128 }
 0x12b   : > { %1305 = vmatpush3.bf16.msra.mxu1 %v1304_v15  ;;  %s2432_s17 = sshll.u32 %s889_s20, 7  ;;  %s2713_s2 = smov %s2712_s15 }
 0x12c   : > { %1270 = vmatmul.mubr.msk.f32.vlgmr.msra.gmra.mrb[0].mxu0 %vm625_vm1, %v613_v16  ;;  %s2444_s0 = scalar_lea.hbm %s2711_s23, %s2432_s17  ;;  %s2452_s4 = scalar_lea.hbm %s2712_s15, %s2432_s17 }
 0x12d   : > { %1308 = vmatpush3.bf16.msra.mxu0 %v1307_v17  ;;  %1291 = vmatprep.mubr.msk.f32.mxu0 %vm1923_vm0, %v1924_v1  ;;  %p1694_p3 = scmp.ne.s32.totalorder %s2446_s27, %s1693_s14  ;;  %p2714_p9 = scmp.ne.s32.totalorder %s2684_s13, 0 }
 0x12e   : > { %1281 = vmatmul.mubr.msk.f32.vlgmr.msra.gmra.mrb[0].mxu1 %vm625_vm1, %v613_v16  ;;  %1309 = vmatprep.subr.bf16.mxu0 %v1922_v0  ;;  %s1925_s19 = smov [#allocation15]  }
 0x12f   : > { %p1695_p1 = pnand %p1694_p3, %p2714_p9  ;;  %s1697_s21 = sshll.u32 %s1925_s19, 4  ;;  %s1698_s21 = int_to_ptr.vmem [resolvable:$false] %s1697_s21 }
 0x130   : > { %s1699_s20 = scalar_lea.vmem %s1698_s21, 256  ;;  %p1700_p13 = scmp.lt.s32.totalorder %s2446_s27, %s1698_s21 }
 0x131   : > { %1311 = vmatpush3.bf16.msra.mxu0 %v1310_v20  ;;  %p1696_p11 = pneg %p1695_p1  ;;  %p1701_p5 = scmp.lt.s32.totalorder %s1699_s20, %s1693_s14 }
 0x133   : > { %p1702_p4 = por %p1701_p5, %p1700_p13 }
 0x134   : > { %1292 = vmatmul.mubr.msk.f32.vlgmr.msra.gmra.mrb[2].mxu0 %vm625_vm1, %v613_v16 }
 0x135   : > { %p1703_p10 = pnand %p1702_p4, %p1696_p11 }
 0x1ff   : > { %v695_v23 = vpop.f32.mrb[0].mxu0 }
 0x200   : > { %v696_v24 = vadd.f32 %v1226_v21, %v695_v23  ;;  %v1271_v25 = vpop.f32.mrb[1].mxu0 }
 0x201   : > { %v776_v26 = vpop.f32.mrb[0].mxu1 }
 0x202   : > { %v777_v27 = vadd.f32 %v1228_v22, %v776_v26  ;;  %v1282_v28 = vpop.f32.mrb[1].mxu1  ;;  %v861_v29 = vmul.f32 0.35355338, %v696_v24 }
 0x204   : > { %864 = vst.msk [vmem:[%s605_s9] sm:$0xff] %vm862_vm2, %v777_v27 }
 0x205   : > { %1706 = shalt.err (!%p1703_p10)
}
 0x206   : > { %s1707_s9 = scalar_lea.hbm %s2444_s0, 128  ;;  %s1711_s5 = scalar_lea.hbm %s2711_s23, 1024 }
 0x207   : > { %p1708_p7 = scmp.ne.s32.totalorder %s2444_s0, %s1707_s9  ;;  %p1712_p2 = scmp.lt.u32.totalorder %s2444_s0, %s2711_s23 }
 0x208   : > { %p1713_p6 = scmp.lt.u32.totalorder %s1711_s5, %s1707_s9  ;;  %p1715_p3 = scmp.lt.u32.totalorder %s1707_s9, %s2444_s0 }
 0x209   : > { %p1709_p0 = pnand %p1708_p7, %p2714_p9 }
 0x20a   : > { %p1714_p8 = por %p1713_p6, %p1712_p2 }
 0x20b   : > { %p1710_p12 = pneg %p1709_p0 }
 0x20c   : > { %p1716_p1 = por %p1715_p3, %p1714_p8 }
 0x20e   : > { %p1717_p11 = pnand %p1716_p1, %p1710_p12 }
 0x210   : > { %1720 = shalt.err (!%p1717_p11)
}
 0x211   : > { %1327 = dma.vmem_to_hbm [thread:$0]  (%p2714_p9), %s2446_s27, 128, %s2444_s0, %s872_s12   ;;  %863 = vst.msk [vmem:[%s598_s30] sm:$0xff] %vm862_vm2, %v861_v29 }
 0x212   : > { %s541_s14 = scalar_lea.vmem [#allocation13], %s2392_s25  ;;  %s867_s19 = scalar_lea.sflag [#allocation4], %s596_s24 }
 0x213   : > { %v1230_v30 = vld [vmem:[%s541_s14] ss:$0 sm:$0xff]  ;;  %s1721_s21 = scalar_lea.vmem %s2454_s6, 128  ;;  %s1926_s20 = smov [#allocation14]  }
 0x214   : > { %p1722_p13 = scmp.ne.s32.totalorder %s2454_s6, %s1721_s21  ;;  %s1725_s9 = sshll.u32 %s1926_s20, 4  ;;  %s1726_s9 = int_to_ptr.vmem [resolvable:$false] %s1725_s9 }
 0x215   : > { %s1727_s29 = scalar_lea.vmem %s1726_s9, 256  ;;  %p1728_p10 = scmp.lt.s32.totalorder %s2454_s6, %s1726_s9 }
 0x216   : > { %p1723_p5 = pnand %p1722_p13, %p2714_p9  ;;  %p1729_p7 = scmp.lt.s32.totalorder %s1727_s29, %s1721_s21 }
 0x218   : > { %p1724_p4 = pneg %p1723_p5  ;;  %p1730_p0 = por %p1729_p7, %p1728_p10 }
 0x21a   : > { %p1731_p12 = pnand %p1730_p0, %p1724_p4 }
 0x21c   : > { %1734 = shalt.err (!%p1731_p12)
}
 0x21d   : > { %s1735_s25 = scalar_lea.hbm %s2452_s4, 128  ;;  %s1739_s30 = scalar_lea.hbm %s2713_s2, 1024 }
 0x21e   : > { %p1736_p2 = scmp.ne.s32.totalorder %s2452_s4, %s1735_s25  ;;  %p1740_p3 = scmp.lt.u32.totalorder %s2452_s4, %s2713_s2 }
 0x21f   : > { %p1741_p1 = scmp.lt.u32.totalorder %s1739_s30, %s1735_s25  ;;  %p1743_p13 = scmp.lt.u32.totalorder %s1735_s25, %s2452_s4 }
 0x220   : > { %p1737_p6 = pnand %p1736_p2, %p2714_p9 }
 0x221   : > { %p1742_p11 = por %p1741_p1, %p1740_p3 }
 0x222   : > { %p1738_p8 = pneg %p1737_p6 }
 0x223   : > { %p1744_p5 = por %p1743_p13, %p1742_p11 }
 0x225   : > { %p1745_p4 = pnand %p1744_p5, %p1738_p8 }
 0x227   : > { %1748 = shalt.err (!%p1745_p4)
}
 0x228   : > { %1326 = dma.vmem_to_hbm [thread:$0]  (%p2714_p9), %s2454_s6, 128, %s2452_s4, %s867_s19   ;;  %v857_v31 = vpop.f32.mrb[2].mxu0 }
 0x229   : > { %v858_v32 = vadd.f32 %v1230_v30, %v857_v31  ;;  %v1293_v33 = vpop.f32.mrb[3].mxu0  ;;  %s2715_s15 = sld [smem:[#allocation51_spill]]  ;;  %s1749_s21 = scalar_lea.vmem %s926_s18, 128 }
 0x22a   : > { %p1750_p10 = scmp.ne.s32.totalorder %s926_s18, %s1749_s21  ;;  %s1927_s20 = smov [#allocation17]  }
 0x22b   : > { %865 = vst.msk [vmem:[%s612_s3] sm:$0xff] %vm862_vm2, %v858_v32  ;;  %s1753_s29 = sshll.u32 %s1927_s20, 4  ;;  %s1754_s29 = int_to_ptr.vmem [resolvable:$false] %s1753_s29 }
 0x22c   : > { %p1751_p7 = pnand %p1750_p10, %p2714_p9  ;;  %s1755_s6 = scalar_lea.vmem %s1754_s29, 256 }
 0x22d   : > { %p1756_p12 = scmp.lt.s32.totalorder %s926_s18, %s1754_s29  ;;  %p1757_p2 = scmp.lt.s32.totalorder %s1755_s6, %s1749_s21 }
 0x22e   : > { %p1752_p0 = pneg %p1751_p7 }
 0x22f   : > { %s2716_s9 = smov %s2715_s15  ;;  %s2517_s14 = scalar_lea.hbm %s2715_s15, %s2432_s17 }
 0x230   : > { %p1758_p6 = por %p1757_p2, %p1756_p12 }
 0x232   : > { %p1759_p8 = pnand %p1758_p6, %p1752_p0 }
 0x234   : > { %1762 = shalt.err (!%p1759_p8)
}
 0x235   : > { %s1763_s1 = scalar_lea.hbm %s2517_s14, 128  ;;  %s1767_s3 = scalar_lea.hbm %s2716_s9, 1024 }
 0x236   : > { %p1764_p3 = scmp.ne.s32.totalorder %s2517_s14, %s1763_s1  ;;  %p1768_p13 = scmp.lt.u32.totalorder %s2517_s14, %s2716_s9 }
 0x237   : > { %p1769_p5 = scmp.lt.u32.totalorder %s1767_s3, %s1763_s1  ;;  %p1771_p10 = scmp.lt.u32.totalorder %s1763_s1, %s2517_s14 }
 0x238   : > { %p1765_p1 = pnand %p1764_p3, %p2714_p9 }
 0x239   : > { %p1770_p4 = por %p1769_p5, %p1768_p13 }
 0x23a   : > { %p1766_p11 = pneg %p1765_p1 }
 0x23b   : > { %p1772_p7 = por %p1771_p10, %p1770_p4 }
 0x23d   : > { %p1773_p0 = pnand %p1772_p7, %p1766_p11 }
 0x23f   : > { %1776 = shalt.err (!%p1773_p0)
}
 0x240   : > { %1328 = dma.vmem_to_hbm [thread:$0]  (%p2714_p9), %s926_s18, 128, %s2517_s14, %s872_s12  }
 0x241 PF: > { %s2717_s24 = sld [smem:[#allocation24_spill]]  ;;  %s2718_s27 = sld [smem:[#allocation41_spill]] }
 0x242   : > { %p1365_p12 = scmp.ge.s32.totalorder %s1911_s22, 2 }
 0x247   : > { %s937_s30 = sand.u32 1, %s2717_s24   ;;  %p2719_p2 = scmp.ne.s32.totalorder %s2718_s27, 0 }
 0x248   : > { %s938_s0 = scalar_lea.sflag [#allocation4], %s937_s30 }
 0x249   : > { %p1355_p6 = pnand %p1365_p12, %p2719_p2 }
 0x24b   : > { %1850 = dma.done.wait (!%p1355_p6), %s938_s0, 128  }
 0x24c   : > { %1852 = vsyncadd (!%p1355_p6), %s938_s0, 4294967168  ;;  %s2720_s8 = sadd.s32 4294967294, %s1911_s22  }
 0x24d   : > { %s946_s5 = sand.u32 1, %s2720_s8  }
 0x24e   : > { %s947_s7 = scalar_lea.sflag [#allocation16], %s946_s5 }
 0x24f   : > { %1854 = dma.done.wait (!%p1355_p6), %s947_s7, 256  }
 0x250   : > { %1856 = vsyncadd (!%p1355_p6), %s947_s7, 4294967040  ;;  %s38_s22 = sadd.s32 1, %s1911_s22   ;;  %s2722_s11 = sld [smem:[#allocation25_spill]] }
 0x251   : > { %p2549_p9 = scmp.ge.s32.totalorder %s38_s22, 10   ;;  %s2723_s18 = sld [smem:[#allocation40_spill]] }
 0x252   : > { %s2724_s12 = sld [smem:[#allocation26_spill]]  ;;  %s2725_s15 = sld [smem:[#allocation27_spill]] }
 0x253   : > { %s2726_s14 = sld [smem:[#allocation38_spill]]  ;;  %s2727_s21 = sld [smem:[#allocation28_spill]] }
 0x254   : > { %s2728_s17 = sld [smem:[#allocation39_spill]]  ;;  %s2729_s20 = sld [smem:[#allocation31_spill]] }
 0x255   : > { %s2730_s19 = sld [smem:[#allocation32_spill]]  ;;  %s2731_s29 = sld [smem:[#allocation35_spill]] }
 0x256   : > { %s2732_s6 = sld [smem:[#allocation36_spill]]  ;;  %s2734_s30 = smov %s1863_s10 }
 0x257   : > { %s2735_s10 = smov %s2722_s11  ;;  %s2736_s11 = smov %s2723_s18 }
 0x258   : > { %s2737_s13 = smov %s2725_s15  ;;  %s2738_s15 = smov %s1887_s16 }
 0x259   : > { %s2739_s16 = smov %s2727_s21  ;;  %37 = sbr.rel (!%p2549_p9) target bundleno = 29 (0x1d), region = 197 }
 0x25a   : > { %s2740_s18 = smov %s2729_s20 }
 0x25b   : > { %s2741_s20 = smov %s2731_s29 }
 0x25c   : > { %s2742_s21 = smov %s2732_s6 }
 0x260   :  { %961 = vsyncpa [#allocation3], 1 }
 0x261   :  { %963 = vsyncpa [#allocation3 + $0x1], 1 }
 0x262   :  { %964 = vsyncpa [#allocation6], 1 }
 0x263   :  { %966 = vsyncpa [#allocation6 + $0x1], 1 }
 0x264   :  { %967 = vsyncpa [#allocation9], 1 }
 0x265   :  { %969 = vsyncpa [#allocation9 + $0x1], 1 }
 0x266   :  { %970 = vsyncpa [#allocation12], 1 }
 0x267   :  { %972 = vsyncpa [#allocation12 + $0x1], 1 }
 0x268   :  { %973 = vsyncpa [#allocation4], 1 }
 0x269   :  { %975 = vsyncpa [#allocation4 + $0x1], 1 }
 0x26a   :  { %976 = vsyncpa [#allocation16], 1 }
 0x26b   :  { %978 = vsyncpa [#allocation16 + $0x1], 1 }

</bundles_post_ra>
